<compile_context>
chip_gen: v6e
topology: v6e:2x2x1
jax: 0.10.0
libtpu: 0.0.40
codegen_flags: <defaults>
</compile_context>

<pallas_src>
import functools

import jax
import jax.numpy as jnp
from jax.experimental import pallas as pl
from jax.experimental.pallas import tpu as pltpu

_LANE = 128


def _round_up(x: int, m: int) -> int:
    return ((x + m - 1) // m) * m


def _largest_divisor_leq(n: int, k: int) -> int:
    k = max(1, min(n, k))
    for d in range(k, 0, -1):
        if n % d == 0:
            return d
    return 1


def _make_dlinear_kernel(tile_b: int):
    def kernel(x_ref, w_ref, b_ref, o_ref):
        # x_ref: (tile_b, seq_len, tile_c)   activations, native [B, S, C] layout
        # w_ref: (pred_len, seq_len)         resident weight
        # b_ref: (pred_len, 1)               resident bias (f32)
        # o_ref: (tile_b, pred_len, tile_c)  native layout output (C on lanes)
        w = w_ref[...]
        b = b_ref[...]
        for i in range(tile_b):            # static unroll; per-batch 2-D MXU matmul
            xi = x_ref[i]
            if xi.dtype != w.dtype:
                xi = xi.astype(w.dtype)    # in-VMEM cast (no extra HBM pass)
            y = jnp.dot(w, xi, preferred_element_type=jnp.float32)
            o_ref[i] = (y + b).astype(o_ref.dtype)

    return kernel


def _xla_forward(x, weight, bias):
    # Small-problem fallback: fused XLA einsum in the native layout (no permutes needed).
    y = jnp.einsum("ps,bsc->bpc", weight, x, preferred_element_type=jnp.float32)
    return (y + bias.astype(jnp.float32)[None, :, None]).astype(x.dtype)


@functools.partial(
    jax.jit,
    static_argnames=("compute_dtype", "force_pallas", "block_budget_bytes", "max_unroll"),
)
def dlinear_forward(x, weight, bias, *, compute_dtype=None, force_pallas=False,
                    block_budget_bytes=4 * 1024 * 1024, max_unroll=8):
    """DLinear forward (individual=False).

    x:      [B, seq_len, C]
    weight: [pred_len, seq_len]
    bias:   [pred_len]
    Returns [B, pred_len, C]  (same layout as the PyTorch module).
    """
    B, seq_len, C = x.shape
    pred_len = weight.shape[0]
    out_dtype = x.dtype

    # Tiny problems: pallas_call fixed cost dominates -> fused XLA dot instead.
    if not force_pallas and x.size < (1 << 15):
        return _xla_forward(x, weight, bias)

    w = weight if compute_dtype is None else weight.astype(compute_dtype)
    b2 = bias.astype(jnp.float32).reshape(pred_len, 1)

    in_item = x.dtype.itemsize
    out_item = jnp.dtype(out_dtype).itemsize
    w_item = jnp.dtype(w.dtype).itemsize

    # ---- channel (lane) tiling ------------------------------------------------
    per_col_bytes = max(seq_len * in_item, pred_len * out_item)
    if C <= 2 * _LANE or C * per_col_bytes <= block_budget_bytes:
        tile_c = C                       # single full-C block (always a legal block dim)
    else:
        tile_c = (block_budget_bytes // per_col_bytes) // _LANE * _LANE
        tile_c = int(max(_LANE, min(tile_c, 4 * _LANE)))
    c_pad = C if tile_c == C else _round_up(C, tile_c)
    if c_pad != C:
        x = jnp.pad(x, ((0, 0), (0, 0), (0, c_pad - C)))

    # ---- batch tiling (tile_b always divides B -> no row padding waste) -------
    per_batch_bytes = max(seq_len * tile_c * in_item, pred_len * tile_c * out_item)
    cap = int(max(1, block_budget_bytes // max(1, per_batch_bytes)))
    cap = min(cap, max_unroll, B)
    tile_b = _largest_divisor_leq(B, cap)
    grid_b = B // tile_b
    grid_c = c_pad // tile_c
    if grid_b * grid_c < 2 and tile_b > 1:
        # keep >= 2 grid steps so the "parallel" axes can shard across v7x's 2 cores
        tile_b = _largest_divisor_leq(B, tile_b // 2)
        grid_b = B // tile_b

    # ---- VMEM budget / cost hint ----------------------------------------------
    x_blk_bytes = tile_b * seq_len * tile_c * in_item
    o_blk_bytes = tile_b * pred_len * tile_c * out_item
    w_bytes = pred_len * seq_len * w_item
    vmem_need = 2 * (x_blk_bytes + o_blk_bytes) + 2 * w_bytes + 2 * pred_len * 4 + (1 << 16)
    vmem_limit = int(max(32 * 1024 * 1024, int(vmem_need * 1.25)))

    cost = pl.CostEstimate(
        flops=2 * B * C * seq_len * pred_len,
        transcendentals=0,
        bytes_accessed=int(B * seq_len * c_pad * in_item + w_bytes + pred_len * 4
                           + B * pred_len * c_pad * out_item),
    )

    out = pl.pallas_call(
        _make_dlinear_kernel(tile_b),
        out_shape=jax.ShapeDtypeStruct((B, pred_len, c_pad), out_dtype),
        grid_spec=pltpu.PrefetchScalarGridSpec(
            num_scalar_prefetch=0,
            grid=(grid_b, grid_c),
            in_specs=[
                pl.BlockSpec((tile_b, seq_len, tile_c), lambda bb, cc: (bb, 0, cc)),
                pl.BlockSpec((pred_len, seq_len), lambda bb, cc: (0, 0)),   # resident W
                pl.BlockSpec((pred_len, 1), lambda bb, cc: (0, 0)),         # resident b
            ],
            out_specs=pl.BlockSpec((tile_b, pred_len, tile_c), lambda bb, cc: (bb, 0, cc)),
        ),
        compiler_params=pltpu.CompilerParams(
            dimension_semantics=("parallel", "parallel"),
            vmem_limit_bytes=vmem_limit,
        ),
        cost_estimate=cost,
    )(x, w, b2)

    if c_pad != C:
        out = out[:, :, :C]
    return out


def _reference(x, weight, bias):
    # Pure-JAX reference matching the PyTorch forward exactly.
    x_perm = jnp.transpose(x, (0, 2, 1))                     # [B, C, seq_len]
    ref = jnp.einsum("bcs,ps->bcp", x_perm, weight) + bias   # [B, C, pred_len]
    return jnp.transpose(ref, (0, 2, 1))                     # [B, pred_len, C]


if __name__ == "__main__":
    key = jax.random.PRNGKey(0)

    # ---- Test 1: spec-consistent small shapes, Pallas path forced ----
    B, seq_len, pred_len, enc_in = 2, 16, 8, 8
    kx, kw, kb, key = *jax.random.split(key, 3), key
    x = jax.random.normal(kx, (B, seq_len, enc_in), dtype=jnp.float32)
    bound = 1.0 / (seq_len ** 0.5)
    weight = jax.random.uniform(kw, (pred_len, seq_len), minval=-bound, maxval=bound,
                                dtype=jnp.float32)
    bias = jax.random.uniform(kb, (pred_len,), minval=-bound, maxval=bound,
                              dtype=jnp.float32)

    out = jax.block_until_ready(dlinear_forward(x, weight, bias, force_pallas=True))
    ref = _reference(x, weight, bias)
    assert out.shape == (B, pred_len, enc_in)
    assert jnp.allclose(out, ref, atol=1e-5, rtol=1e-5)

    # Default path (tiny-problem XLA fallback) must match too.
    out_fb = jax.block_until_ready(dlinear_forward(x, weight, bias))
    assert jnp.allclose(out_fb, ref, atol=1e-5, rtol=1e-5)

    # ---- Test 2: slightly larger shapes exercising tile_b > 1 (unrolled loop) ----
    B2, seq2, pred2, C2 = 4, 32, 16, 24
    k1, k2, k3 = jax.random.split(jax.random.PRNGKey(1), 3)
    x2 = jax.random.normal(k1, (B2, seq2, C2), dtype=jnp.float32)
    bound2 = 1.0 / (seq2 ** 0.5)
    w2 = jax.random.uniform(k2, (pred2, seq2), minval=-bound2, maxval=bound2,
                            dtype=jnp.float32)
    b2 = jax.random.uniform(k3, (pred2,), minval=-bound2, maxval=bound2,
                            dtype=jnp.float32)
    out2 = jax.block_until_ready(dlinear_forward(x2, w2, b2, force_pallas=True))
    ref2 = _reference(x2, w2, b2)
    assert out2.shape == (B2, pred2, C2)
    assert jnp.allclose(out2, ref2, atol=1e-5, rtol=1e-5)

    print("KERNEL_OK")
</pallas_src>

<mosaic_0001>
module attributes {stable_mosaic.version = 11 : i64} {
  func.func @kernel(%arg0: i32, %arg1: i32, %arg2: memref<1x16x8xf32, #tpu.memory_space<vmem>>, %arg3: memref<8x16xf32, #tpu.memory_space<vmem>>, %arg4: memref<8x1xf32, #tpu.memory_space<vmem>>, %arg5: memref<1x8x8xf32, #tpu.memory_space<vmem>>) attributes {dimension_semantics = [#tpu.dimension_semantics<parallel>, #tpu.dimension_semantics<parallel>], iteration_bounds = array<i64: 2, 1>, scalar_prefetch = 0 : i64, scratch_operands = 0 : i64, tpu.core_type = #tpu.core_type<tc>, window_params = [{transform_indices = @transform_0, window_bounds = array<i64: 1, 16, 8>}, {pipeline_mode = #tpu.pipeline_mode<synchronous>, transform_indices = @transform_1, window_bounds = array<i64: 8, 16>}, {pipeline_mode = #tpu.pipeline_mode<synchronous>, transform_indices = @transform_2, window_bounds = array<i64: 8, 1>}, {transform_indices = @transform_3, window_bounds = array<i64: 1, 8, 8>}]} {
    %c0 = arith.constant 0 : index
    %c0_0 = arith.constant 0 : index
    %0 = vector.load %arg3[%c0, %c0_0] : memref<8x16xf32, #tpu.memory_space<vmem>>, vector<8x16xf32>
    %c0_1 = arith.constant 0 : index
    %c0_2 = arith.constant 0 : index
    %1 = vector.load %arg4[%c0_1, %c0_2] : memref<8x1xf32, #tpu.memory_space<vmem>>, vector<8x1xf32>
    %c0_3 = arith.constant 0 : index
    %c0_4 = arith.constant 0 : index
    %c0_5 = arith.constant 0 : index
    %2 = vector.load %arg2[%c0_3, %c0_4, %c0_5] : memref<1x16x8xf32, #tpu.memory_space<vmem>>, vector<1x16x8xf32>
    %3 = vector.shape_cast %2 : vector<1x16x8xf32> to vector<16x8xf32>
    %cst = arith.constant dense<0.000000e+00> : vector<8x8xf32>
    %4 = tpu.matmul %0, %3, %cst {dimension_numbers = #tpu.dot_dimension_numbers<[1], [0], [0], [1], [0, 0, 1, 1], [], []>} : vector<8x16xf32>, vector<16x8xf32>, vector<8x8xf32> -> vector<8x8xf32>
    %5 = vector.broadcast %1 : vector<8x1xf32> to vector<8x8xf32>
    %6 = arith.addf %4, %5 : vector<8x8xf32>
    %c0_6 = arith.constant 0 : index
    %c0_7 = arith.constant 0 : index
    %c0_8 = arith.constant 0 : index
    %7 = vector.load %arg5[%c0_6, %c0_7, %c0_8] : memref<1x8x8xf32, #tpu.memory_space<vmem>>, vector<1x8x8xf32>
    %8 = vector.shape_cast %7 : vector<1x8x8xf32> to vector<8x8xf32>
    %9 = vector.shape_cast %6 : vector<8x8xf32> to vector<1x8x8xf32>
    tpu.vector_store %arg5[%c0_6, %c0_7, %c0_8], %9 {strides = array<i32>} : memref<1x8x8xf32, #tpu.memory_space<vmem>>, vector<1x8x8xf32>,
    return
  }
  func.func @transform_0(%arg0: i32, %arg1: i32) -> (i32, i32, i32) {
    %c0_i32 = arith.constant 0 : i32
    %c0_i32_0 = arith.constant 0 : i32
    return %arg0, %c0_i32, %arg1 : i32, i32, i32
  }
  func.func @transform_1(%arg0: i32, %arg1: i32) -> (i32, i32) {
    %c0_i32 = arith.constant 0 : i32
    %c0_i32_0 = arith.constant 0 : i32
    %c0_i32_1 = arith.constant 0 : i32
    return %c0_i32, %c0_i32_0 : i32, i32
  }
  func.func @transform_2(%arg0: i32, %arg1: i32) -> (i32, i32) {
    %c0_i32 = arith.constant 0 : i32
    %c0_i32_0 = arith.constant 0 : i32
    %c0_i32_1 = arith.constant 0 : i32
    return %c0_i32, %c0_i32_0 : i32, i32
  }
  func.func @transform_3(%arg0: i32, %arg1: i32) -> (i32, i32, i32) {
    %c0_i32 = arith.constant 0 : i32
    %c0_i32_0 = arith.constant 0 : i32
    return %arg0, %c0_i32, %arg1 : i32, i32, i32
  }
}

</mosaic_0001>

<bundles_post_ra>
// kernel: dlinear_forward.1
= control target key start
LH: loop header
LB: loop body
LE: loop exit
PB: predicated region body
PF: predicated region fallthrough
CT: control target
= control target key end

     0   :  { %8 = vsyncpa [#allocation3], 0  ;;  %s664_s0 = inlined_call_operand.vmem [shape: f32[2,16,8], index: 0, kind: input, shape index: {}]   ;;  %s665_s1 = inlined_call_operand.vmem [shape: f32[8,16], index: 1, kind: input, shape index: {}]   ;;  %s666_s2 = inlined_call_operand.vmem [shape: f32[8,1], index: 2, kind: input, shape index: {}]   ;;  %s667_s3 = inlined_call_operand.hbm [shape: f32[2,8,8], index: 3, kind: output, shape index: {}]  }
   0x1   :  { %10 = vsyncpa [#allocation3 + $0x1], 0  ;;  %s553_s12 = smov 0   ;;  %s555_s13 = smov 0  }
   0x2   :  { %s557_s14 = smov 0   ;;  %s559_s15 = smov 0  }
   0x3   :  { %s561_s16 = smov 0   ;;  %s563_s17 = smov 0  }
   0x4 LB: > { %s368_s18 = sadd.s32 4294967295, %s527_s17   ;;  %s369_s19 = sadd.s32 4294967294, %s527_s17   ;;  %s527_s17 = sphi %s563_s17, %s16_s17   ;;  %s523_s16 = sphi %s561_s16, %s674_s16   ;;  %s519_s15 = sphi %s559_s15, %s673_s15   ;;  %s515_s14 = sphi %s557_s14, %s672_s14   ;;  %s511_s13 = sphi %s555_s13, %s671_s13   ;;  %s507_s12 = sphi %s553_s12, %s670_s12  }
   0x5   : > { %s28_s20 = sadd.s32 1, %s523_s16  ;;  %s107_s21 = sadd.s32 1, %s515_s14 }
   0x6   : > { %p30_p0 = scmp.ge.s32.totalorder %s28_s20, 2  ;;  %p117_p1 = scmp.ne.s32.totalorder %s515_s14, %s511_s13 }
   0x7   : > { %p118_p2 = scmp.eq.s32.totalorder %s368_s18, 1  ;;  %p123_p3 = scmp.ne.s32.totalorder %s511_s13, %s507_s12 }
   0x8   : > { %s676_s20 = smov (%p30_p0, %s28_s20), 0  ;;  %p124_p5 = scmp.eq.s32.totalorder %s369_s19, 1 }
   0x9   : > { %p593_p4 = por %p118_p2, %p117_p1  ;;  %s102_s23 = ssub.s32 %s523_s16, %s676_s20 }
   0xa   : > { %p372_p6 = scmp.ge.s32.totalorder %s527_s17, 1  ;;  %p105_p7 = scmp.eq.s32.totalorder %s102_s23, 0 }
   0xb   : > { %p600_p8 = por %p124_p5, %p123_p3  ;;  %p159_p9 = scmp.lt.s32.totalorder %s527_s17, 3 }
   0xc   : > { %s606_s25 = scalar_select %p105_p7, %s515_s14, %s107_s21  }
   0xd   : > { %p160_p10 = pnand %p372_p6, %p159_p9 }
   0xe   : > { %p186_p11 = scmp.lt.s32.totalorder (!%p160_p10), %s519_s15, 1  ;;  %s183_s8 = sand.u32 (!%p160_p10), 1, %s511_s13  }
   0xf   : > { %163 = sbr.rel (%p160_p10) target bundleno = 236 (0xec), region = 32  ;;  %s373_s9 = sshll.u32 (!%p160_p10), %s183_s8, 3 }
  0x10   : > { %s378_s10 = sshll.u32 (!%p160_p10), %s519_s15, 7  ;;  %s185_s11 = scalar_lea.vmem (!%p160_p10), [#allocation2], %s373_s9 }
  0x11   : > { %s294_s18 = sshll.u32 (!%p160_p10), %s185_s11, 4  ;;  %s624_s23 = scalar_lea.hbm (!%p160_p10), %s667_s3, %s378_s10  ;;  %s295_s18 = int_to_ptr.vmem [resolvable:$true] %s294_s18 }
  0x12   : > { %s280_s26 = scalar_lea.sflag (!%p160_p10), [#allocation3], %s183_s8  ;;  %s451_s27 = scalar_lea.vmem (!%p160_p10), %s295_s18, 128 }
  0x13   : > { %p452_p12 = scmp.ne.s32.totalorder (!%p160_p10), %s295_s18, %s451_s27 }
  0x14   : > { %v529_v0 = vmov 0.0   ;;  %vm530_vm0 = vmmov 0   ;;  %v195_v1 = vld [vmem:[%s666_s2] sm:$0xff]  ;;  %s187_s28 = scalar_select %p186_p11, %s519_s15, 1  ;;  %v531_v2 = vmov 0   ;;  %vm203_vm1 = vcmask 130048  }
  0x15   : > { %385 = vmatprep.subr.mxu0 %v529_v0  ;;  %389 = vmatprep.mubr.msk.f32.mxu0 %vm530_vm0, %v529_v0  ;;  %v194_v5 = vld [vmem:[%s665_s1] sm:$0xff]  ;;  %vm277_vm2 = vcmask 64512   ;;  %p453_p13 = pnand %p452_p12, %p593_p4  ;;  %s532_s15 = smov [#allocation2]  }
  0x16   : > { %450 = vset.pattern.permute.xlu0 %v531_v2  ;;  %s381_s29 = sshll.u32 %s187_s28, 4  ;;  %s455_s28 = sshll.u32 %s532_s15, 4  ;;  %s456_s28 = int_to_ptr.vmem [resolvable:$false] %s455_s28 }
  0x17   : > { %200 = vperm.xlu0 %450, %v195_v1   ;;  %s193_s5 = scalar_lea.vmem %s664_s0, %s381_s29  ;;  %p454_p0 = pneg %p453_p13 }
  0x18   : > { %v197_v3 = vld [vmem:[%s193_s5 + $0x8] sm:$0xff]  ;;  %v196_v4 = vld [vmem:[%s193_s5] sm:$0xff]  ;;  %s457_s29 = scalar_lea.vmem %s456_s28, 256  ;;  %p458_p1 = scmp.lt.s32.totalorder %s295_s18, %s456_s28 }
  0x19   : > { %386 = vmatpush3.msra.mxu0 %v197_v3  ;;  %p459_p2 = scmp.lt.s32.totalorder %s457_s29, %s451_s27 }
  0x1a   : > { %387 = vmatprep.subr.mxu0 %v529_v0 }
  0x1b   : > { %388 = vmatpush3.msra.mxu0 %v196_v4  ;;  %p460_p3 = por %p459_p2, %p458_p1 }
  0x1c   : > { %390 = vmatmul.mubr.msk.f32.vlgmr.msra.gmra.mxu0 %vm203_vm1, %v194_v5 }
  0x1d   : > { %p461_p5 = pnand %p460_p3, %p454_p0 }
  0x92   : > { %v201_v6 = vpop.permute.xlu0 %200 }
  0xdc   : > { %v273_v7 = vpop.f32.mrf.mxu0 }
  0xdd   : > { %v274_v8 = vadd.f32 %v273_v7, %v201_v6 }
  0xde   : > { %v391_v9 = vpop.f32.mrf.mxu0 }
  0xdf   : > { %278 = vst.msk [vmem:[%s185_s11] sm:$0xff] %vm277_vm2, %v274_v8 }
  0xe0   : > { %464 = shalt.err (!%p461_p5)
}
  0xe1   : > { %s465_s30 = scalar_lea.hbm %s624_s23, 128  ;;  %s469_s6 = scalar_lea.hbm %s667_s3, 256 }
  0xe2   : > { %p466_p6 = scmp.ne.s32.totalorder %s624_s23, %s465_s30  ;;  %p470_p10 = scmp.lt.s32.totalorder %s624_s23, %s667_s3 }
  0xe3   : > { %p471_p11 = scmp.lt.s32.totalorder %s469_s6, %s465_s30 }
  0xe4   : > { %p467_p7 = pnand %p466_p6, %p593_p4 }
  0xe5   : > { %p472_p12 = por %p471_p11, %p470_p10 }
  0xe6   : > { %p468_p9 = pneg %p467_p7 }
  0xe8   : > { %p473_p13 = pnand %p472_p12, %p468_p9 }
  0xea   : > { %476 = shalt.err (!%p473_p13)
}
  0xeb   : > { %392 = dma.vmem_to_hbm [thread:$0]  (%p593_p4), %s295_s18, 128, %s624_s23, %s280_s26  }
  0xec PF: > { %p398_p0 = scmp.ge.s32.totalorder %s527_s17, 2  ;;  %s306_s9 = sand.u32 1, %s507_s12  }
  0xed   : > { %s307_s10 = scalar_lea.sflag [#allocation3], %s306_s9 }
  0xee   : > { %p395_p1 = pnand %p398_p0, %p600_p8 }
  0xf0   : > { %p396_p2 = pneg %p395_p1 }
  0xf2   : > { %502 = dma.done.wait (%p396_p2), %s307_s10, 128  }
  0xf3   : > { %504 = vsyncadd (%p396_p2), %s307_s10, 4294967168  ;;  %s16_s17 = sadd.s32 1, %s527_s17   ;;  %s670_s12 = smov %s511_s13 }
  0xf4   : > { %p13_p3 = scmp.ge.s32.totalorder %s16_s17, 4   ;;  %s671_s13 = smov %s515_s14 }
  0xf5   : > { %s672_s14 = smov %s606_s25  ;;  %s673_s15 = smov %s523_s16 }
  0xf6   : > { %s674_s16 = smov %s676_s20  ;;  %15 = sbr.rel (!%p13_p3) target bundleno = 4 (0x4), region = 67 }
  0xfb   :  { %312 = vsyncpa [#allocation3], 1 }
  0xfc   :  { %314 = vsyncpa [#allocation3 + $0x1], 1 }

</bundles_post_ra>
